<compile_context>
chip_gen: v7x
topology: tpu7x:2x2x1
jax: 0.10.0
libtpu: 0.0.40
codegen_flags: <defaults>
</compile_context>

<pallas_src>
import jax
import jax.numpy as jnp
from jax.experimental import pallas as pl
from jax.experimental.pallas import tpu as pltpu


def _make_fused_mlp_kernel(num_layers):
    """Kernel refs: (x, w0, b0, w1, b1, ..., w{L-1}, b{L-1}, out)."""

    def kernel(*refs):
        x_ref = refs[0]
        o_ref = refs[-1]
        h = x_ref[...].astype(jnp.float32)
        for l in range(num_layers):
            w_ref = refs[1 + 2 * l]
            b_ref = refs[2 + 2 * l]
            # MXU matmul; operands cast to the stored weight dtype (f32 or bf16),
            # accumulation in f32.
            acc = jnp.dot(
                h.astype(w_ref.dtype), w_ref[...],
                preferred_element_type=jnp.float32,
            )
            # Bias add + sigmoid epilogue in f32 (bias broadcast over batch).
            h = jax.nn.sigmoid(acc + b_ref[...])
        o_ref[...] = h.astype(o_ref.dtype)

    return kernel


def init_params(key, input_size, hidden_sizes, output_size):
    """Matches torch.nn.Linear default init: uniform(-1/sqrt(fan_in), 1/sqrt(fan_in)).
    Weight stored as (in, out) = transpose of PyTorch's (out, in); bias as (1, out)
    so the kernel needs no per-call reshape."""
    sizes = [input_size] + list(hidden_sizes) + [output_size]
    params = []
    for i in range(len(sizes) - 1):
        fan_in, fan_out = sizes[i], sizes[i + 1]
        key, kw, kb = jax.random.split(key, 3)
        bound = 1.0 / (fan_in ** 0.5)
        w = jax.random.uniform(kw, (fan_in, fan_out), jnp.float32, -bound, bound)
        b = jax.random.uniform(kb, (1, fan_out), jnp.float32, -bound, bound)
        params.append((w, b))
    return params


def cast_weights(params, dtype):
    """Optional weight-storage cast (bf16 on v6e/v7x). Bias stays f32."""
    return [(w.astype(dtype), b) for w, b in params]


@jax.jit
def mlp_forward(x, params):
    """One fused, gridless pallas_call for the whole MLP. Returns (B, output_size)."""
    B = x.shape[0]
    num_layers = len(params)
    out_size = params[-1][0].shape[1]

    flat = []
    for w, b in params:
        flat.extend((w, b))

    # Advisory cost hint: real flops / transcendentals / bytes (unpadded).
    flops = sum(2 * B * w.shape[0] * w.shape[1] for w, _ in params)
    transcendentals = sum(B * w.shape[1] for w, _ in params)  # one exp per sigmoid out
    bytes_accessed = (
        x.size * x.dtype.itemsize
        + sum(w.size * w.dtype.itemsize + b.size * b.dtype.itemsize for w, b in params)
        + B * out_size * x.dtype.itemsize
    )

    return pl.pallas_call(
        _make_fused_mlp_kernel(num_layers),
        out_shape=jax.ShapeDtypeStruct((B, out_size), x.dtype),
        in_specs=[pl.BlockSpec(memory_space=pltpu.MemorySpace.VMEM)]
        * (1 + 2 * num_layers),
        out_specs=pl.BlockSpec(memory_space=pltpu.MemorySpace.VMEM),
        cost_estimate=pl.CostEstimate(
            flops=flops,
            transcendentals=transcendentals,
            bytes_accessed=bytes_accessed,
        ),
    )(x, *flat)


if __name__ == "__main__":
    key = jax.random.PRNGKey(0)
    input_size = 32
    hidden_sizes = [64, 48]
    output_size = 16
    batch = 8

    key, kx = jax.random.split(key)
    x = jax.random.normal(kx, (batch, input_size), jnp.float32)

    params = init_params(key, input_size, hidden_sizes, output_size)

    # Reference in plain JAX.
    ref = x
    for w, b in params:
        ref = jax.nn.sigmoid(ref @ w + b)

    # f32 weights (exact PyTorch semantics).
    out = jax.block_until_ready(mlp_forward(x, params))
    assert out.shape == (batch, output_size)
    assert jnp.allclose(out, ref, atol=1e-5, rtol=1e-5)

    # bf16 weight storage (v6e/v7x fast path): half the weight DMA, f32 accumulate.
    params_bf16 = cast_weights(params, jnp.bfloat16)
    out_bf16 = jax.block_until_ready(mlp_forward(x, params_bf16))
    assert out_bf16.shape == (batch, output_size)
    assert jnp.allclose(out_bf16, ref, atol=2e-2, rtol=2e-2)

    print("KERNEL_OK")
</pallas_src>

<mosaic_0001>
module attributes {stable_mosaic.version = 11 : i64} {
  func.func @kernel(%arg0: memref<8x32xf32, #tpu.memory_space<vmem>>, %arg1: memref<32x64xf32, #tpu.memory_space<vmem>>, %arg2: memref<1x64xf32, #tpu.memory_space<vmem>>, %arg3: memref<64x48xf32, #tpu.memory_space<vmem>>, %arg4: memref<1x48xf32, #tpu.memory_space<vmem>>, %arg5: memref<48x16xf32, #tpu.memory_space<vmem>>, %arg6: memref<1x16xf32, #tpu.memory_space<vmem>>, %arg7: memref<8x16xf32, #tpu.memory_space<vmem>>) attributes {dimension_semantics = [], scalar_prefetch = 0 : i64, scratch_operands = 0 : i64, tpu.core_type = #tpu.core_type<tc>} {
    %c0 = arith.constant 0 : index
    %c0_0 = arith.constant 0 : index
    %0 = vector.load %arg0[%c0, %c0_0] : memref<8x32xf32, #tpu.memory_space<vmem>>, vector<8x32xf32>
    %c0_1 = arith.constant 0 : index
    %c0_2 = arith.constant 0 : index
    %1 = vector.load %arg1[%c0_1, %c0_2] : memref<32x64xf32, #tpu.memory_space<vmem>>, vector<32x64xf32>
    %cst = arith.constant dense<0.000000e+00> : vector<8x64xf32>
    %2 = tpu.matmul %0, %1, %cst {dimension_numbers = #tpu.dot_dimension_numbers<[1], [0], [0], [1], [0, 0, 1, 1], [], []>} : vector<8x32xf32>, vector<32x64xf32>, vector<8x64xf32> -> vector<8x64xf32>
    %c0_3 = arith.constant 0 : index
    %c0_4 = arith.constant 0 : index
    %3 = vector.load %arg2[%c0_3, %c0_4] : memref<1x64xf32, #tpu.memory_space<vmem>>, vector<1x64xf32>
    %4 = vector.broadcast %3 : vector<1x64xf32> to vector<8x64xf32>
    %5 = arith.addf %2, %4 : vector<8x64xf32>
    %6 = arith.negf %5 : vector<8x64xf32>
    %7 = math.exp %6 : vector<8x64xf32>
    %cst_5 = arith.constant 1.000000e+00 : f32
    %8 = vector.broadcast %cst_5 : f32 to vector<8x64xf32>
    %9 = arith.addf %8, %7 : vector<8x64xf32>
    %10 = arith.divf %8, %9 : vector<8x64xf32>
    %c0_6 = arith.constant 0 : index
    %c0_7 = arith.constant 0 : index
    %11 = vector.load %arg3[%c0_6, %c0_7] : memref<64x48xf32, #tpu.memory_space<vmem>>, vector<64x48xf32>
    %cst_8 = arith.constant dense<0.000000e+00> : vector<8x48xf32>
    %12 = tpu.matmul %10, %11, %cst_8 {dimension_numbers = #tpu.dot_dimension_numbers<[1], [0], [0], [1], [0, 0, 1, 1], [], []>} : vector<8x64xf32>, vector<64x48xf32>, vector<8x48xf32> -> vector<8x48xf32>
    %c0_9 = arith.constant 0 : index
    %c0_10 = arith.constant 0 : index
    %13 = vector.load %arg4[%c0_9, %c0_10] : memref<1x48xf32, #tpu.memory_space<vmem>>, vector<1x48xf32>
    %14 = vector.broadcast %13 : vector<1x48xf32> to vector<8x48xf32>
    %15 = arith.addf %12, %14 : vector<8x48xf32>
    %16 = arith.negf %15 : vector<8x48xf32>
    %17 = math.exp %16 : vector<8x48xf32>
    %cst_11 = arith.constant 1.000000e+00 : f32
    %18 = vector.broadcast %cst_11 : f32 to vector<8x48xf32>
    %19 = arith.addf %18, %17 : vector<8x48xf32>
    %20 = arith.divf %18, %19 : vector<8x48xf32>
    %c0_12 = arith.constant 0 : index
    %c0_13 = arith.constant 0 : index
    %21 = vector.load %arg5[%c0_12, %c0_13] : memref<48x16xf32, #tpu.memory_space<vmem>>, vector<48x16xf32>
    %cst_14 = arith.constant dense<0.000000e+00> : vector<8x16xf32>
    %22 = tpu.matmul %20, %21, %cst_14 {dimension_numbers = #tpu.dot_dimension_numbers<[1], [0], [0], [1], [0, 0, 1, 1], [], []>} : vector<8x48xf32>, vector<48x16xf32>, vector<8x16xf32> -> vector<8x16xf32>
    %c0_15 = arith.constant 0 : index
    %c0_16 = arith.constant 0 : index
    %23 = vector.load %arg6[%c0_15, %c0_16] : memref<1x16xf32, #tpu.memory_space<vmem>>, vector<1x16xf32>
    %24 = vector.broadcast %23 : vector<1x16xf32> to vector<8x16xf32>
    %25 = arith.addf %22, %24 : vector<8x16xf32>
    %26 = arith.negf %25 : vector<8x16xf32>
    %27 = math.exp %26 : vector<8x16xf32>
    %cst_17 = arith.constant 1.000000e+00 : f32
    %28 = vector.broadcast %cst_17 : f32 to vector<8x16xf32>
    %29 = arith.addf %28, %27 : vector<8x16xf32>
    %30 = arith.divf %28, %29 : vector<8x16xf32>
    %c0_18 = arith.constant 0 : index
    %c0_19 = arith.constant 0 : index
    %31 = vector.load %arg7[%c0_18, %c0_19] : memref<8x16xf32, #tpu.memory_space<vmem>>, vector<8x16xf32>
    tpu.vector_store %arg7[%c0_18, %c0_19], %30 {strides = array<i32>} : memref<8x16xf32, #tpu.memory_space<vmem>>, vector<8x16xf32>,
    return
  }
}

</mosaic_0001>

<bundles_post_ra>
// kernel: mlp_forward.1
= control target key start
LH: loop header
LB: loop body
LE: loop exit
PB: predicated region body
PF: predicated region fallthrough
CT: control target
= control target key end

     0   :  { %v465_v3 = vmov 0.0|0.0   ;;  %vm466_vm0 = vmmov 0   ;;  %v467_v6 = vmov 0.0   ;;  %s587_s0 = inlined_call_operand.vmem [shape: f32[8,32], index: 0, kind: input, shape index: {}]   ;;  %s588_s1 = inlined_call_operand.vmem [shape: f32[32,64], index: 1, kind: input, shape index: {}]   ;;  %s589_s2 = inlined_call_operand.vmem [shape: f32[1,64], index: 2, kind: input, shape index: {}]   ;;  %s590_s3 = inlined_call_operand.vmem [shape: f32[64,48], index: 3, kind: input, shape index: {}]   ;;  %s591_s4 = inlined_call_operand.vmem [shape: f32[1,48], index: 4, kind: input, shape index: {}]   ;;  %s592_s5 = inlined_call_operand.vmem [shape: f32[48,16], index: 5, kind: input, shape index: {}]   ;;  %s593_s6 = inlined_call_operand.vmem [shape: f32[1,16], index: 6, kind: input, shape index: {}]   ;;  %s594_s7 = inlined_call_operand.hbm [shape: f32[8,16], index: 7, kind: output, shape index: {}]  }
   0x1   :  { %v28_v0 = vld [vmem:[%s588_s1] sm:$0xff]  ;;  %v29_v1 = vld [vmem:[%s588_s1 + $0x8] sm:$0xff]  ;;  %v30_v2 = vld [vmem:[%s588_s1 + $0x10] sm:$0xff]  ;;  %398 = vmatprep.subr.bf16.mxu0 %v465_v3  ;;  %361 = vmatprep.mubr.msk.f32.mxu0 %vm466_vm0, %v467_v6 }
   0x2   :  { %v399_v4 = vpack.c.bf16 %v29_v1, %v28_v0  ;;  %v31_v5 = vld [vmem:[%s588_s1 + $0x18] sm:$0xff]  ;;  %404 = vmatprep.subr.bf16.mxu1 %v465_v3  ;;  %380 = vmatprep.mubr.msk.f32.mxu1 %vm466_vm0, %v467_v6 }
   0x3   :  { %12 = vsyncpa [#allocation3], 0  ;;  %v402_v7 = vpack.c.bf16 %v31_v5, %v30_v2  ;;  %v27_v8 = vld [vmem:[%s587_s0] sm:$0xff]  ;;  %vm39_vm1 = vcmask 261120   ;;  %v120_v10 = vld [vmem:[%s590_s3 + $0x8] sm:$0xff]  ;;  %vm134_vm2 = vcmask 523264  }
   0x4   :  { %400 = vmatpush3.bf16.msra.mxu0 %v399_v4  ;;  %v119_v9 = vld [vmem:[%s590_s3] sm:$0xff]  ;;  %v121_v12 = vld [vmem:[%s590_s3 + $0x10] sm:$0xff]  ;;  %v122_v13 = vld [vmem:[%s590_s3 + $0x18] sm:$0xff]  ;;  %vm227_vm3 = vcmask 392192   ;;  %vm307_vm4 = vcmask 130048  }
   0x5   :  { %401 = vmatprep.subr.bf16.mxu0 %v465_v3  ;;  %v405_v11 = vpack.c.bf16 %v120_v10, %v119_v9  ;;  %v408_v14 = vpack.c.bf16 %v122_v13, %v121_v12  ;;  %v123_v15 = vld [vmem:[%s590_s3 + $0x20] sm:$0xff]  ;;  %v124_v16 = vld [vmem:[%s590_s3 + $0x28] sm:$0xff]  ;;  %v125_v18 = vld [vmem:[%s590_s3 + $0x30] sm:$0xff] }
   0x6   :  { %v411_v17 = vpack.c.bf16 %v124_v16, %v123_v15  ;;  %v126_v19 = vld [vmem:[%s590_s3 + $0x38] sm:$0xff]  ;;  %v323_v21 = vld [vmem:[%s589_s2] ss:$0 sm:$0xff]  ;;  %v215_v30 = vld [vmem:[%s592_s5 + $0x8] sm:$0xff] }
   0x7   :  { %406 = vmatpush3.bf16.msra.mxu1 %v405_v11  ;;  %v414_v20 = vpack.c.bf16 %v126_v19, %v125_v18  ;;  %v214_v29 = vld [vmem:[%s592_s5] sm:$0xff]  ;;  %v216_v32 = vld [vmem:[%s592_s5 + $0x10] sm:$0xff]  ;;  %v217_v33 = vld [vmem:[%s592_s5 + $0x18] sm:$0xff] }
   0x8   :  { %403 = vmatpush3.bf16.msra.mxu0 %v402_v7  ;;  %407 = vmatprep.subr.bf16.mxu1 %v465_v3  ;;  %v417_v31 = vpack.c.bf16 %v215_v30, %v214_v29  ;;  %v420_v34 = vpack.c.bf16 %v217_v33, %v216_v32  ;;  %v218_v35 = vld [vmem:[%s592_s5 + $0x20] sm:$0xff]  ;;  %v219_v36 = vld [vmem:[%s592_s5 + $0x28] sm:$0xff] }
   0x9   :  { %416 = vmatprep.subr.bf16.mxu0 %v465_v3  ;;  %v423_v37 = vpack.c.bf16 %v219_v36, %v218_v35  ;;  %v326_v38 = vld [vmem:[%s591_s4] ss:$0 sm:$0xff]  ;;  %s468_s4 = smov [#allocation2]  }
   0xa   :  { %v329_v46 = vld [vmem:[%s593_s6] ss:$0 sm:$0xff]  ;;  %s315_s0 = sshll.u32 %s468_s4, 4  ;;  %s316_s0 = int_to_ptr.vmem [resolvable:$true] %s315_s0 }
   0xb   :  { %362 = vmatmul.mubr.msk.f32.vlgmr.msra.gmra.mrb[0].mxu0 %vm39_vm1, %v27_v8  ;;  %409 = vmatpush3.bf16.msra.mxu1 %v408_v14  ;;  %s441_s16 = scalar_lea.vmem %s316_s0, 128  ;;  %p446_p1 = scmp.lt.s32.totalorder %s316_s0, %s316_s0 }
   0xc   :  { %395 = vmatprep.mubr.msk.f32.mxu0 %vm466_vm0, %v467_v6  ;;  %410 = vmatprep.subr.bf16.mxu1 %v465_v3  ;;  %p442_p0 = scmp.ne.s32.totalorder %s316_s0, %s441_s16  ;;  %p447_p2 = scmp.lt.s32.totalorder %s441_s16, %s441_s16 }
   0xd   :  { %418 = vmatpush3.bf16.msra.mxu0 %v417_v31 }
   0xe   :  { %419 = vmatprep.subr.bf16.mxu0 %v465_v3  ;;  %p448_p3 = por %p447_p2, %p446_p1 }
   0xf   :  { %412 = vmatpush3.bf16.msra.mxu1 %v411_v17 }
  0x10   :  { %413 = vmatprep.subr.bf16.mxu1 %v465_v3  ;;  %p449_p4 = pnand %p448_p3, %p442_p0 }
  0x11   :  { %421 = vmatpush3.bf16.msra.mxu0 %v420_v34 }
  0x12   :  { %422 = vmatprep.subr.bf16.mxu0 %v465_v3 }
  0x13   :  { %415 = vmatpush3.bf16.msra.mxu1 %v414_v20 }
  0x15   :  { %424 = vmatpush3.bf16.msra.mxu0 %v423_v37 }
  0xde   :  { %v109_v22 = vpop.f32.mrb[0].mxu0 }
  0xdf   :  { %v110_v23 = vadd.f32 %v323_v21, %v109_v22  ;;  %v363_v24 = vpop.f32.mrb[1].mxu0 }
  0xe1   :  { %v325_v25 = vmul.f32 -1.442695, %v110_v23 }
  0xe3   :  { %429 = vpow2.f32 %v325_v25 }
  0xed   :  { %v430_v26 = vpop.eup %429 }
  0xee   :  { %v116_v27 = vadd.f32 1.0, %v430_v26 }
  0xf0   :  { %431 = vrcp.f32 %v116_v27 }
  0xfa   :  { %v432_v28 = vpop.eup %431 }
  0xfb   :  { %381 = vmatmul.mubr.msk.f32.vlgmr.msra.gmra.mrb[0].mxu1 %vm134_vm2, %v432_v28 }
 0x1ce   :  { %v204_v39 = vpop.f32.mrb[0].mxu1 }
 0x1cf   :  { %v205_v40 = vadd.f32 %v326_v38, %v204_v39  ;;  %v382_v41 = vpop.f32.mrb[1].mxu1 }
 0x1d1   :  { %v328_v42 = vmul.f32 -1.442695, %v205_v40 }
 0x1d3   :  { %433 = vpow2.f32 %v328_v42 }
 0x1dd   :  { %v434_v43 = vpop.eup %433 }
 0x1de   :  { %v211_v44 = vadd.f32 1.0, %v434_v43 }
 0x1e0   :  { %435 = vrcp.f32 %v211_v44 }
 0x1ea   :  { %v436_v45 = vpop.eup %435 }
 0x1eb   :  { %396 = vmatmul.mubr.msk.f32.vlgmr.msra.gmra.mrb[2].mxu0 %vm227_vm3, %v436_v45 }
 0x2be   :  { %v297_v47 = vpop.f32.mrb[2].mxu0 }
 0x2bf   :  { %v298_v48 = vadd.f32 %v329_v46, %v297_v47  ;;  %v397_v49 = vpop.f32.mrb[3].mxu0 }
 0x2c1   :  { %v331_v50 = vmul.f32 -1.442695, %v298_v48 }
 0x2c3   :  { %437 = vpow2.f32 %v331_v50 }
 0x2cd   :  { %v438_v51 = vpop.eup %437 }
 0x2ce   :  { %v304_v52 = vadd.f32 1.0, %v438_v51 }
 0x2d0   :  { %439 = vrcp.f32 %v304_v52 }
 0x2da   :  { %v440_v53 = vpop.eup %439 }
 0x2db   :  { %308 = vst.msk [vmem:[#allocation2] sm:$0xff] %vm307_vm4, %v440_v53 }
 0x2dc   :  { %452 = shalt.err (!%p449_p4)
}
 0x2dd   :  { %s453_s18 = scalar_lea.hbm %s594_s7, 128 }
 0x2de   :  { %p454_p5 = scmp.ne.s32.totalorder %s594_s7, %s453_s18  ;;  %p457_p6 = scmp.lt.u32.totalorder %s453_s18, %s594_s7 }
 0x2e0   :  { %p459_p7 = pnand %p457_p6, %p454_p5 }
 0x2e2   :  { %462 = shalt.err (!%p459_p7)
}
 0x2e3   :  { %318 = dma.vmem_to_hbm [thread:$0]  %s316_s0, 128, %s594_s7, [#allocation3]  }
 0x2e4   :  { %463 = dma.done.wait [#allocation3], 128  }
 0x2e5   :  { %464 = vsyncadd [#allocation3], 4294967168 }
 0x2e6   :  { %322 = vsyncpa [#allocation3], 1 }

</bundles_post_ra>
